<compile_context>
chip_gen: v7x
topology: tpu7x:2x2x1
jax: 0.10.0
libtpu: 0.0.40
codegen_flags: <defaults>
</compile_context>

<pallas_src>
import functools

import jax
import jax.numpy as jnp
from jax.experimental import pallas as pl
from jax.experimental.pallas import tpu as pltpu


def _round_up(x: int, m: int) -> int:
    return ((x + m - 1) // m) * m


def _gelu_f32(x, approximate: bool):
    if approximate:
        # tanh approximation: the transcendental runs on the EUP slot, which is
        # nearly free relative to the 4-wide VALU on v6e/v7x.
        c = jnp.float32(0.7978845608028654)  # sqrt(2/pi)
        return 0.5 * x * (1.0 + jnp.tanh(c * (x + jnp.float32(0.044715) * x * x * x)))
    # Exact erf GELU (torch.nn.functional.gelu default).
    return 0.5 * x * (1.0 + jax.lax.erf(x * jnp.float32(0.7071067811865476)))


def _vmem_budget_bytes() -> int:
    """Generation-aware VMEM budget: ~75% of physical, fallback 48 MiB (v7x)."""
    phys = 64 << 20
    try:
        info = pltpu.get_tpu_info()
        phys = int(getattr(info, "vmem_capacity_bytes", phys))
    except Exception:
        pass
    return max(32 << 20, min((phys * 3) // 4, 110 << 20))


# ---------------------------------------------------------------------------
# Kernels
# ---------------------------------------------------------------------------

def _mlp_kernel_resident(x_ref, w_in_ref, b_in_ref, w_out_ref, b_out_ref, o_ref,
                         *, approximate):
    # Weights are fully VMEM-resident (constant index_map -> loaded once/call).
    pre = jnp.dot(x_ref[...], w_in_ref[...],
                  preferred_element_type=jnp.float32) + b_in_ref[...]
    post = _gelu_f32(pre, approximate)
    out = jnp.dot(post.astype(w_out_ref.dtype), w_out_ref[...],
                  preferred_element_type=jnp.float32)
    o_ref[...] = (out + b_out_ref[...]).astype(o_ref.dtype)


def _mlp_kernel_ktiled(x_ref, w_in_ref, b_in_ref, w_out_ref, b_out_ref, o_ref,
                       *scratch, approximate, acc_in_out):
    # Hidden dim tiled along grid axis 1 ("arbitrary").  If the output dtype is
    # f32 we accumulate directly into the resident output tile (acc_in_out);
    # otherwise an f32 VMEM scratch accumulator is used.
    k = pl.program_id(1)
    acc_ref = o_ref if acc_in_out else scratch[0]

    @pl.when(k == 0)
    def _init():
        acc_ref[...] = jnp.zeros_like(acc_ref)

    pre = jnp.dot(x_ref[...], w_in_ref[...],
                  preferred_element_type=jnp.float32) + b_in_ref[...]
    post = _gelu_f32(pre, approximate)
    acc_ref[...] += jnp.dot(post.astype(w_out_ref.dtype), w_out_ref[...],
                            preferred_element_type=jnp.float32)

    @pl.when(k == pl.num_programs(1) - 1)
    def _finalize():
        if acc_in_out:
            o_ref[...] += b_out_ref[...]
        else:
            o_ref[...] = (acc_ref[...] + b_out_ref[...]).astype(o_ref.dtype)


# ---------------------------------------------------------------------------
# Wrapper
# ---------------------------------------------------------------------------

@functools.partial(jax.jit,
                   static_argnames=("tm", "tn", "compute_dtype", "gelu_approximate"))
def mlp_forward(residual_stream, W_input, b_input, W_output, b_output, *,
                tm=1024, tn=512, compute_dtype=jnp.bfloat16, gelu_approximate=True):
    """Pallas GPT-2 MLP forward.  residual_stream: [batch, seq, d_embedding]."""
    batch, seq, d_emb = residual_stream.shape
    d_mlp = W_input.shape[1]
    out_dtype = residual_stream.dtype

    M = batch * seq
    cbytes = jnp.dtype(compute_dtype).itemsize
    obytes = jnp.dtype(out_dtype).itemsize

    # --- row tile --------------------------------------------------------
    tm_eff = min(tm, _round_up(M, 8))
    # Ensure >= 2 row tiles when possible so the "parallel" row axis can split
    # across v7x's two TensorCores (no-op on v5e/v6e).
    if _round_up(M, tm_eff) // tm_eff < 2 and tm_eff >= 16:
        tm_eff = _round_up((tm_eff + 1) // 2, 8)

    # --- hidden-dim tiling candidates -------------------------------------
    d_mlp_res = _round_up(d_mlp, 128)          # resident-weights padding
    tn_eff = min(tn, d_mlp_res)
    d_mlp_kt = _round_up(d_mlp, tn_eff)        # k-tiled padding
    nk = d_mlp_kt // tn_eff

    budget = _vmem_budget_bytes()

    # VMEM needed with fully resident weights (2x weights: conservative about
    # pipeline buffering; (tm, d_mlp) live GELU intermediate in f32 + bf16).
    weights_res_bytes = 2 * d_emb * d_mlp_res * cbytes
    resident_need = (
        2 * weights_res_bytes
        + 2 * tm_eff * d_emb * cbytes          # x tile (double-buffered)
        + 2 * tm_eff * d_emb * obytes          # out tile (double-buffered)
        + tm_eff * d_mlp_res * (4 + cbytes)    # GELU intermediate
        + 2 * (d_mlp_res + d_emb) * 4          # biases
    )
    use_resident = resident_need <= budget

    def _ktiled_need(tm_):
        return (2 * tm_ * d_emb * cbytes
                + 2 * tm_ * d_emb * obytes
                + 2 * d_emb * tn_eff * cbytes
                + 2 * tn_eff * d_emb * cbytes
                + tm_ * tn_eff * (4 + cbytes)
                + tm_ * d_emb * 4
                + 2 * (tn_eff + d_emb) * 4)

    if not use_resident:
        # Shrink the row tile only if the k-tiled working set would not fit.
        while _ktiled_need(tm_eff) > budget and tm_eff > 64:
            tm_eff = _round_up(tm_eff // 2, 8)

    M_pad = _round_up(M, tm_eff)
    n_row_tiles = M_pad // tm_eff
    d_mlp_pad = d_mlp_res if use_resident else d_mlp_kt

    # --- operands ---------------------------------------------------------
    # Weights ideally arrive already in compute_dtype (stored in bf16 by the
    # caller); only cast if they are not, to avoid a per-call HBM convert pass.
    x2d = residual_stream.reshape(M, d_emb)
    if x2d.dtype != compute_dtype:
        x2d = x2d.astype(compute_dtype)
    w_in = W_input if W_input.dtype == compute_dtype else W_input.astype(compute_dtype)
    w_out = W_output if W_output.dtype == compute_dtype else W_output.astype(compute_dtype)
    b_in = b_input.reshape(1, d_mlp).astype(jnp.float32)
    b_out = b_output.reshape(1, d_emb).astype(jnp.float32)

    # Zero padding: gelu(0) == 0 and padded W_out rows are zero, so padded
    # hidden columns contribute nothing; padded rows are sliced off below.
    if M_pad != M:
        x2d = jnp.pad(x2d, ((0, M_pad - M), (0, 0)))
    if d_mlp_pad != d_mlp:
        hp = d_mlp_pad - d_mlp
        w_in = jnp.pad(w_in, ((0, 0), (0, hp)))
        b_in = jnp.pad(b_in, ((0, 0), (0, hp)))
        w_out = jnp.pad(w_out, ((0, hp), (0, 0)))

    flops = 4 * M * d_emb * d_mlp
    transcendentals = M * d_mlp
    act_bytes = M_pad * d_emb * (cbytes + obytes) + (d_mlp_pad + d_emb) * 4

    if use_resident:
        kernel = functools.partial(_mlp_kernel_resident,
                                   approximate=gelu_approximate)
        cost = pl.CostEstimate(
            flops=flops, transcendentals=transcendentals,
            bytes_accessed=act_bytes + 2 * d_emb * d_mlp_pad * cbytes)
        out2d = pl.pallas_call(
            kernel,
            out_shape=jax.ShapeDtypeStruct((M_pad, d_emb), out_dtype),
            grid_spec=pltpu.PrefetchScalarGridSpec(
                num_scalar_prefetch=0,
                grid=(n_row_tiles,),
                in_specs=[
                    pl.BlockSpec((tm_eff, d_emb), lambda i: (i, 0)),      # x rows
                    pl.BlockSpec((d_emb, d_mlp_pad), lambda i: (0, 0)),   # W_in (resident)
                    pl.BlockSpec((1, d_mlp_pad), lambda i: (0, 0)),       # b_in
                    pl.BlockSpec((d_mlp_pad, d_emb), lambda i: (0, 0)),   # W_out (resident)
                    pl.BlockSpec((1, d_emb), lambda i: (0, 0)),           # b_out
                ],
                out_specs=pl.BlockSpec((tm_eff, d_emb), lambda i: (i, 0)),
            ),
            compiler_params=pltpu.CompilerParams(
                dimension_semantics=("parallel",),
                vmem_limit_bytes=int(budget),
            ),
            cost_estimate=cost,
        )(x2d, w_in, b_in, w_out, b_out)
    else:
        acc_in_out = jnp.dtype(out_dtype) == jnp.dtype(jnp.float32)
        kernel = functools.partial(_mlp_kernel_ktiled,
                                   approximate=gelu_approximate,
                                   acc_in_out=acc_in_out)

        # Serpentine k order: on odd row tiles walk the hidden dim backwards so
        # the boundary W_in/W_out slice is reused when i increments.
        def _kk(i, k):
            return k + (i % 2) * (nk - 1 - 2 * k)

        cost = pl.CostEstimate(
            flops=flops, transcendentals=transcendentals,
            bytes_accessed=act_bytes + n_row_tiles * 2 * d_emb * d_mlp_pad * cbytes)
        scratch = [] if acc_in_out else [pltpu.VMEM((tm_eff, d_emb), jnp.float32)]
        out2d = pl.pallas_call(
            kernel,
            out_shape=jax.ShapeDtypeStruct((M_pad, d_emb), out_dtype),
            grid_spec=pltpu.PrefetchScalarGridSpec(
                num_scalar_prefetch=0,
                grid=(n_row_tiles, nk),
                in_specs=[
                    pl.BlockSpec((tm_eff, d_emb), lambda i, k: (i, 0)),        # x rows
                    pl.BlockSpec((d_emb, tn_eff), lambda i, k: (0, _kk(i, k))),  # W_in slice
                    pl.BlockSpec((1, tn_eff), lambda i, k: (0, _kk(i, k))),      # b_in slice
                    pl.BlockSpec((tn_eff, d_emb), lambda i, k: (_kk(i, k), 0)),  # W_out slice
                    pl.BlockSpec((1, d_emb), lambda i, k: (0, 0)),               # b_out
                ],
                out_specs=pl.BlockSpec((tm_eff, d_emb), lambda i, k: (i, 0)),
                scratch_shapes=scratch,
            ),
            compiler_params=pltpu.CompilerParams(
                dimension_semantics=("parallel", "arbitrary"),
                vmem_limit_bytes=int(budget),
            ),
            cost_estimate=cost,
        )(x2d, w_in, b_in, w_out, b_out)

    return out2d[:M].reshape(batch, seq, d_emb)


def _reference_mlp(x, W_in, b_in, W_out, b_out):
    pre = jnp.einsum("bse,em->bsm", x, W_in) + b_in
    post = jax.nn.gelu(pre, approximate=False)   # torch default (exact erf)
    return jnp.einsum("bsm,me->bse", post, W_out) + b_out


if __name__ == "__main__":
    # Small, module-consistent shapes.
    batch, seq = 2, 8
    d_embedding, d_mlp = 32, 128
    initialized_std_range = 0.02

    key = jax.random.PRNGKey(0)
    k_x, k_win, k_wout = jax.random.split(key, 3)

    W_input = (initialized_std_range *
               jax.random.normal(k_win, (d_embedding, d_mlp), dtype=jnp.float32))
    W_output = (initialized_std_range *
                jax.random.normal(k_wout, (d_mlp, d_embedding), dtype=jnp.float32))
    b_input = jnp.zeros((d_mlp,), dtype=jnp.float32)
    b_output = jnp.zeros((d_embedding,), dtype=jnp.float32)

    residual_stream = jax.random.normal(
        k_x, (batch, seq, d_embedding), dtype=jnp.float32)

    # Store weights in the MXU compute dtype once, outside the per-call path,
    # so the kernel wrapper does not pay a per-forward f32->bf16 convert pass.
    W_input_bf16 = jax.block_until_ready(W_input.astype(jnp.bfloat16))
    W_output_bf16 = jax.block_until_ready(W_output.astype(jnp.bfloat16))

    out = mlp_forward(residual_stream, W_input_bf16, b_input,
                      W_output_bf16, b_output)
    out = jax.block_until_ready(out)

    ref = _reference_mlp(residual_stream, W_input, b_input, W_output, b_output)
    assert out.shape == (batch, seq, d_embedding)
    # bf16 MXU operands (f32 accumulation) + tanh-GELU approximation: tolerance
    # sized for bf16 rounding; at these magnitudes tanh vs erf GELU is < 1e-4.
    assert jnp.allclose(out, ref, atol=1e-2, rtol=5e-2), float(
        jnp.max(jnp.abs(out - ref)))

    print("KERNEL_OK")
</pallas_src>

<mosaic_0001>
module attributes {stable_mosaic.version = 11 : i64} {
  func.func @_mlp_kernel_resident(%arg0: i32, %arg1: memref<8x32xbf16, #tpu.memory_space<vmem>>, %arg2: memref<32x128xbf16, #tpu.memory_space<vmem>>, %arg3: memref<1x128xf32, #tpu.memory_space<vmem>>, %arg4: memref<128x32xbf16, #tpu.memory_space<vmem>>, %arg5: memref<1x32xf32, #tpu.memory_space<vmem>>, %arg6: memref<8x32xf32, #tpu.memory_space<vmem>>) attributes {dimension_semantics = [#tpu.dimension_semantics<parallel>], iteration_bounds = array<i64: 2>, scalar_prefetch = 0 : i64, scratch_operands = 0 : i64, tpu.core_type = #tpu.core_type<tc>, window_params = [{transform_indices = @transform_0, window_bounds = array<i64: 8, 32>}, {pipeline_mode = #tpu.pipeline_mode<synchronous>, transform_indices = @transform_1, window_bounds = array<i64: 32, 128>}, {pipeline_mode = #tpu.pipeline_mode<synchronous>, transform_indices = @transform_2, window_bounds = array<i64: 1, 128>}, {pipeline_mode = #tpu.pipeline_mode<synchronous>, transform_indices = @transform_3, window_bounds = array<i64: 128, 32>}, {pipeline_mode = #tpu.pipeline_mode<synchronous>, transform_indices = @transform_4, window_bounds = array<i64: 1, 32>}, {transform_indices = @transform_5, window_bounds = array<i64: 8, 32>}]} {
    %c0 = arith.constant 0 : index
    %c0_0 = arith.constant 0 : index
    %0 = vector.load %arg1[%c0, %c0_0] : memref<8x32xbf16, #tpu.memory_space<vmem>>, vector<8x32xbf16>
    %c0_1 = arith.constant 0 : index
    %c0_2 = arith.constant 0 : index
    %1 = vector.load %arg2[%c0_1, %c0_2] : memref<32x128xbf16, #tpu.memory_space<vmem>>, vector<32x128xbf16>
    %cst = arith.constant dense<0.000000e+00> : vector<8x128xf32>
    %2 = tpu.matmul %0, %1, %cst {dimension_numbers = #tpu.dot_dimension_numbers<[1], [0], [0], [1], [0, 0, 1, 1], [], []>} : vector<8x32xbf16>, vector<32x128xbf16>, vector<8x128xf32> -> vector<8x128xf32>
    %c0_3 = arith.constant 0 : index
    %c0_4 = arith.constant 0 : index
    %3 = vector.load %arg3[%c0_3, %c0_4] : memref<1x128xf32, #tpu.memory_space<vmem>>, vector<1x128xf32>
    %4 = vector.broadcast %3 : vector<1x128xf32> to vector<8x128xf32>
    %5 = arith.addf %2, %4 : vector<8x128xf32>
    %cst_5 = arith.constant 5.000000e-01 : f32
    %6 = vector.broadcast %cst_5 : f32 to vector<8x128xf32>
    %7 = arith.mulf %6, %5 : vector<8x128xf32>
    %cst_6 = arith.constant 4.471500e-02 : f32
    %8 = vector.broadcast %cst_6 : f32 to vector<8x128xf32>
    %9 = arith.mulf %8, %5 : vector<8x128xf32>
    %10 = arith.mulf %9, %5 : vector<8x128xf32>
    %11 = arith.mulf %10, %5 : vector<8x128xf32>
    %12 = arith.addf %5, %11 : vector<8x128xf32>
    %cst_7 = arith.constant 0.797884583 : f32
    %13 = vector.broadcast %cst_7 : f32 to vector<8x128xf32>
    %14 = arith.mulf %13, %12 : vector<8x128xf32>
    %15 = math.tanh %14 : vector<8x128xf32>
    %cst_8 = arith.constant 1.000000e+00 : f32
    %16 = vector.broadcast %cst_8 : f32 to vector<8x128xf32>
    %17 = arith.addf %16, %15 : vector<8x128xf32>
    %18 = arith.mulf %7, %17 : vector<8x128xf32>
    %19 = arith.truncf %18 : vector<8x128xf32> to vector<8x128xbf16>
    %c0_9 = arith.constant 0 : index
    %c0_10 = arith.constant 0 : index
    %20 = vector.load %arg4[%c0_9, %c0_10] : memref<128x32xbf16, #tpu.memory_space<vmem>>, vector<128x32xbf16>
    %cst_11 = arith.constant dense<0.000000e+00> : vector<8x32xf32>
    %21 = tpu.matmul %19, %20, %cst_11 {dimension_numbers = #tpu.dot_dimension_numbers<[1], [0], [0], [1], [0, 0, 1, 1], [], []>} : vector<8x128xbf16>, vector<128x32xbf16>, vector<8x32xf32> -> vector<8x32xf32>
    %c0_12 = arith.constant 0 : index
    %c0_13 = arith.constant 0 : index
    %22 = vector.load %arg5[%c0_12, %c0_13] : memref<1x32xf32, #tpu.memory_space<vmem>>, vector<1x32xf32>
    %23 = vector.broadcast %22 : vector<1x32xf32> to vector<8x32xf32>
    %24 = arith.addf %21, %23 : vector<8x32xf32>
    %c0_14 = arith.constant 0 : index
    %c0_15 = arith.constant 0 : index
    %25 = vector.load %arg6[%c0_14, %c0_15] : memref<8x32xf32, #tpu.memory_space<vmem>>, vector<8x32xf32>
    tpu.vector_store %arg6[%c0_14, %c0_15], %24 {strides = array<i32>} : memref<8x32xf32, #tpu.memory_space<vmem>>, vector<8x32xf32>,
    return
  }
  func.func @transform_0(%arg0: i32) -> (i32, i32) {
    %c0_i32 = arith.constant 0 : i32
    %c0_i32_0 = arith.constant 0 : i32
    return %arg0, %c0_i32 : i32, i32
  }
  func.func @transform_1(%arg0: i32) -> (i32, i32) {
    %c0_i32 = arith.constant 0 : i32
    %c0_i32_0 = arith.constant 0 : i32
    %c0_i32_1 = arith.constant 0 : i32
    return %c0_i32, %c0_i32_0 : i32, i32
  }
  func.func @transform_2(%arg0: i32) -> (i32, i32) {
    %c0_i32 = arith.constant 0 : i32
    %c0_i32_0 = arith.constant 0 : i32
    %c0_i32_1 = arith.constant 0 : i32
    return %c0_i32, %c0_i32_0 : i32, i32
  }
  func.func @transform_3(%arg0: i32) -> (i32, i32) {
    %c0_i32 = arith.constant 0 : i32
    %c0_i32_0 = arith.constant 0 : i32
    %c0_i32_1 = arith.constant 0 : i32
    return %c0_i32, %c0_i32_0 : i32, i32
  }
  func.func @transform_4(%arg0: i32) -> (i32, i32) {
    %c0_i32 = arith.constant 0 : i32
    %c0_i32_0 = arith.constant 0 : i32
    %c0_i32_1 = arith.constant 0 : i32
    return %c0_i32, %c0_i32_0 : i32, i32
  }
  func.func @transform_5(%arg0: i32) -> (i32, i32) {
    %c0_i32 = arith.constant 0 : i32
    %c0_i32_0 = arith.constant 0 : i32
    return %arg0, %c0_i32 : i32, i32
  }
}

</mosaic_0001>

<bundles_post_ra>
// kernel: mlp_forward.1
= control target key start
LH: loop header
LB: loop body
LE: loop exit
PB: predicated region body
PF: predicated region fallthrough
CT: control target
= control target key end

     0   :  { %10 = vsyncpa [#allocation3], 0  ;;  %s835_s0 = inlined_call_operand.vmem [shape: bf16[16,32], index: 0, kind: input, shape index: {}]   ;;  %s836_s1 = inlined_call_operand.vmem [shape: bf16[32,128], index: 1, kind: input, shape index: {}]   ;;  %s837_s2 = inlined_call_operand.vmem [shape: f32[1,128], index: 2, kind: input, shape index: {}]   ;;  %s838_s3 = inlined_call_operand.vmem [shape: bf16[128,32], index: 3, kind: input, shape index: {}]   ;;  %s839_s4 = inlined_call_operand.vmem [shape: f32[1,32], index: 4, kind: input, shape index: {}]   ;;  %s840_s5 = inlined_call_operand.hbm [shape: f32[16,32], index: 5, kind: output, shape index: {}]  }
   0x1   :  { %12 = vsyncpa [#allocation3 + $0x1], 0  ;;  %s697_s18 = smov 0   ;;  %s699_s19 = smov 0  }
   0x2   :  { %s701_s20 = smov 0   ;;  %s703_s21 = smov 0  }
   0x3 LB: > { %s718_s22 = sadd.s32 4294967295, %s662_s21   ;;  %s484_s23 = sadd.s32 4294967294, %s662_s21   ;;  %s662_s21 = sphi %s703_s21, %s846_s21   ;;  %s658_s20 = sphi %s701_s20, %s845_s20   ;;  %s654_s19 = sphi %s699_s19, %s844_s19   ;;  %s650_s18 = sphi %s697_s18, %s843_s18  }
   0x4   : > { %s722_s24 = sadd.s32 1, %s662_s21   ;;  %s135_s25 = sadd.s32 1, %s658_s20 }
   0x5   : > { %s132_s26 = ssub.s32 %s662_s21, %s722_s24  ;;  %p145_p0 = scmp.ne.s32.totalorder %s658_s20, %s654_s19 }
   0x6   : > { %p133_p1 = scmp.eq.s32.totalorder %s132_s26, 0  ;;  %p146_p2 = scmp.eq.s32.totalorder %s718_s22, 1 }
   0x7   : > { %p151_p3 = scmp.ne.s32.totalorder %s654_s19, %s650_s18  ;;  %p152_p4 = scmp.eq.s32.totalorder %s484_s23, 1 }
   0x8   : > { %s733_s27 = scalar_select %p133_p1, %s658_s20, %s135_s25  }
   0x9   : > { %p735_p5 = por %p146_p2, %p145_p0  ;;  %p739_p6 = por %p152_p4, %p151_p3 }
   0xa   : > { %p487_p7 = scmp.ge.s32.totalorder %s662_s21, 1  ;;  %p189_p8 = scmp.lt.s32.totalorder %s662_s21, 3 }
   0xc   : > { %p190_p9 = pnand %p487_p7, %p189_p8 }
   0xd   : > { %v588_v0 = vld [vmem:[%s836_s1] sm:$0xff] (!%p190_p9)   ;;  %v664_v1 = vmov (!%p190_p9), 0.0   ;;  %v589_v2 = vld [vmem:[%s836_s1 + $0x8] sm:$0xff] (!%p190_p9)   ;;  %vm665_vm0 = vmmov (!%p190_p9), 0   ;;  %p216_p10 = scmp.lt.s32.totalorder (!%p190_p9), %s718_s22, 1  ;;  %vm245_vm1 = vcmask (!%p190_p9), 261120  }
   0xe   : > { %193 = sbr.rel (%p190_p9) target bundleno = 495 (0x1ef), region = 40  ;;  %519 = vmatprep.subr.bf16.mxu0 (!%p190_p9), %v664_v1  ;;  %527 = vmatprep.subr.bf16.mxu1 (!%p190_p9), %v664_v1  ;;  %v590_v3 = vld [vmem:[%s838_s3] sm:$0xff] (!%p190_p9)   ;;  %v591_v5 = vld [vmem:[%s838_s3 + $0x8] sm:$0xff] (!%p190_p9)   ;;  %v592_v6 = vld [vmem:[%s838_s3 + $0x10] sm:$0xff] (!%p190_p9)   ;;  %s213_s16 = sand.u32 (!%p190_p9), 1, %s654_s19  }
   0xf   : > { %520 = vmatpush3.bf16.msra.mxu0 (!%p190_p9), %v588_v0  ;;  %523 = vmatprep.mubr.msk.bf16.mxu0 (!%p190_p9), %vm665_vm0, %v664_v1  ;;  %v593_v7 = vld [vmem:[%s838_s3 + $0x18] sm:$0xff] (!%p190_p9)   ;;  %v594_v8 = vld [vmem:[%s838_s3 + $0x20] sm:$0xff] (!%p190_p9)   ;;  %v595_v9 = vld [vmem:[%s838_s3 + $0x28] sm:$0xff] (!%p190_p9)   ;;  %s488_s17 = sshll.u32 (!%p190_p9), %s213_s16, 3  ;;  %s504_s26 = sshll.u32 (!%p190_p9), %s718_s22, 7 }
  0x10   : > { %521 = vmatprep.subr.bf16.mxu0 (!%p190_p9), %v664_v1  ;;  %543 = vmatprep.mubr.msk.bf16.mxu1 (!%p190_p9), %vm665_vm0, %v664_v1  ;;  %v596_v10 = vld [vmem:[%s838_s3 + $0x30] sm:$0xff] (!%p190_p9)   ;;  %v597_v11 = vld [vmem:[%s838_s3 + $0x38] sm:$0xff] (!%p190_p9)   ;;  %v490_v12 = vld [vmem:[%s837_s2] ss:$0 sm:$0xff] (!%p190_p9)  ;;  %s215_s30 = scalar_lea.vmem (!%p190_p9), [#allocation2], %s488_s17  ;;  %s792_s9 = scalar_lea.hbm (!%p190_p9), %s840_s5, %s504_s26 }
  0x11   : > { %528 = vmatpush3.bf16.msra.mxu1 (!%p190_p9), %v590_v3  ;;  %v494_v28 = vld [vmem:[%s839_s4] ss:$0 sm:$0xff] (!%p190_p9)  ;;  %s425_s6 = sshll.u32 (!%p190_p9), %s215_s30, 4  ;;  %s794_s6 = int_to_ptr.vmem [resolvable:$true] %s425_s6 }
  0x12   : > { %529 = vmatprep.subr.bf16.mxu1 (!%p190_p9), %v664_v1  ;;  %s600_s10 = scalar_lea.vmem (!%p190_p9), %s794_s6, 128 }
  0x13   : > { %522 = vmatpush3.bf16.msra.mxu0 (!%p190_p9), %v589_v2  ;;  %p601_p11 = scmp.ne.s32.totalorder (!%p190_p9), %s794_s6, %s600_s10 }
  0x15   : > { %s217_s11 = scalar_select %p216_p10, %s718_s22, 1  ;;  %530 = vmatpush3.bf16.msra.mxu1 %v591_v5 }
  0x16   : > { %531 = vmatprep.subr.bf16.mxu1 %v664_v1  ;;  %s412_s22 = scalar_lea.sflag [#allocation3], %s213_s16  ;;  %p602_p12 = pnand %p601_p11, %p735_p5 }
  0x17   : > { %s489_s12 = sshll.u32 %s217_s11, 2  ;;  %s666_s11 = smov [#allocation2]  }
  0x18   : > { %s219_s15 = scalar_lea.vmem %s835_s0, %s489_s12  ;;  %p603_p13 = pneg %p602_p12 }
  0x19   : > { %v221_v4 = vld [vmem:[%s219_s15] sm:$0xf]  ;;  %532 = vmatpush3.bf16.msra.mxu1 %v592_v6  ;;  %s604_s12 = sshll.u32 %s666_s11, 4  ;;  %s605_s12 = int_to_ptr.vmem [resolvable:$false] %s604_s12 }
  0x1a   : > { %524 = vmatmul.mubr.msk.bf16.vlgmr.msra.gmra.mrb[0].mxu0 %vm245_vm1, %v221_v4  ;;  %533 = vmatprep.subr.bf16.mxu1 %v664_v1  ;;  %s606_s13 = scalar_lea.vmem %s605_s12, 256  ;;  %p607_p0 = scmp.lt.s32.totalorder %s794_s6, %s605_s12 }
  0x1b   : > { %p608_p1 = scmp.lt.s32.totalorder %s606_s13, %s600_s10 }
  0x1d   : > { %534 = vmatpush3.bf16.msra.mxu1 %v593_v7  ;;  %p609_p2 = por %p608_p1, %p607_p0 }
  0x1e   : > { %535 = vmatprep.subr.bf16.mxu1 %v664_v1 }
  0x1f   : > { %p610_p3 = pnand %p609_p2, %p603_p13 }
  0x21   : > { %536 = vmatpush3.bf16.msra.mxu1 %v594_v8 }
  0x22   : > { %537 = vmatprep.subr.bf16.mxu1 %v664_v1 }
  0x25   : > { %538 = vmatpush3.bf16.msra.mxu1 %v595_v9 }
  0x26   : > { %539 = vmatprep.subr.bf16.mxu1 %v664_v1 }
  0x29   : > { %540 = vmatpush3.bf16.msra.mxu1 %v596_v10 }
  0x2a   : > { %541 = vmatprep.subr.bf16.mxu1 %v664_v1 }
  0x2d   : > { %542 = vmatpush3.bf16.msra.mxu1 %v597_v11 }
  0xed   : > { %v283_v13 = vpop.f32.mrb[0].mxu0 }
  0xee   : > { %v284_v14 = vadd.f32 %v490_v12, %v283_v13  ;;  %v525_v15 = vpop.f32.mrb[1].mxu0 }
  0xef   : > { %v286_v16 = vpop.f32.mrb[2].mxu0 }
  0xf0   : > { %v290_v17 = vmul.f32 0.044715, %v284_v14  ;;  %v526_v18 = vpop.f32.mrb[3].mxu0  ;;  %v289_v24 = vmul.f32 0.5, %v284_v14 }
  0xf2   : > { %v291_v19 = vmul.f32 %v290_v17, %v284_v14 }
  0xf4   : > { %v292_v20 = vmul.f32 %v291_v19, %v284_v14 }
  0xf6   : > { %v293_v21 = vadd.f32 %v292_v20, %v284_v14 }
  0xf8   : > { %v294_v22 = vmul.f32 0.7978846, %v293_v21 }
  0xfa   : > { %598 = vtanh.f32 %v294_v22 }
 0x104   : > { %v599_v23 = vpop.eup %598 }
 0x105   : > { %v296_v25 = vadd.f32 1.0, %v599_v23 }
 0x107   : > { %v297_v26 = vmul.f32 %v296_v25, %v289_v24 }
 0x109   : > { %v298_v27 = vpack.c.bf16 %v297_v26, %v297_v26 }
 0x10b   : > { %544 = vmatmul.mubr.bf16.vlgmr.msra.gmra.mrb[0].mxu1 %v298_v27 }
 0x1de   : > { %v404_v29 = vpop.f32.mrb[0].mxu1 }
 0x1df   : > { %v405_v30 = vadd.f32 %v494_v28, %v404_v29  ;;  %v545_v31 = vpop.f32.mrb[1].mxu1 }
 0x1e0   : > { %v407_v32 = vpop.f32.mrb[2].mxu1 }
 0x1e1   : > { %v546_v33 = vpop.f32.mrb[3].mxu1  ;;  %410 = vst.msk [vmem:[%s215_s30] sm:$0xff] %vm245_vm1, %v405_v30 }
 0x1e2   : > { %613 = shalt.err (!%p610_p3)
}
 0x1e3   : > { %s614_s14 = scalar_lea.hbm %s792_s9, 128  ;;  %s618_s17 = scalar_lea.hbm %s840_s5, 256 }
 0x1e4   : > { %p615_p4 = scmp.ne.s32.totalorder %s792_s9, %s614_s14  ;;  %p619_p9 = scmp.lt.u32.totalorder %s792_s9, %s840_s5 }
 0x1e5   : > { %p620_p10 = scmp.lt.u32.totalorder %s618_s17, %s614_s14  ;;  %p622_p12 = scmp.lt.u32.totalorder %s614_s14, %s792_s9 }
 0x1e6   : > { %p616_p7 = pnand %p615_p4, %p735_p5 }
 0x1e7   : > { %p621_p11 = por %p620_p10, %p619_p9 }
 0x1e8   : > { %p617_p8 = pneg %p616_p7 }
 0x1e9   : > { %p623_p13 = por %p622_p12, %p621_p11 }
 0x1eb   : > { %p624_p0 = pnand %p623_p13, %p617_p8 }
 0x1ed   : > { %627 = shalt.err (!%p624_p0)
}
 0x1ee   : > { %547 = dma.vmem_to_hbm [thread:$0]  (%p735_p5), %s794_s6, 128, %s792_s9, %s412_s22  }
 0x1ef PF: > { %p553_p1 = scmp.ge.s32.totalorder %s662_s21, 2  ;;  %s437_s26 = sand.u32 1, %s650_s18  }
 0x1f0   : > { %s438_s30 = scalar_lea.sflag [#allocation3], %s437_s26 }
 0x1f1   : > { %p550_p2 = pnand %p553_p1, %p739_p6 }
 0x1f3   : > { %645 = dma.done.wait (!%p550_p2), %s438_s30, 128  }
 0x1f4   : > { %647 = vsyncadd (!%p550_p2), %s438_s30, 4294967168  ;;  %p15_p3 = scmp.ge.s32.totalorder %s722_s24, 4   ;;  %s843_s18 = smov %s654_s19 }
 0x1f5   : > { %s844_s19 = smov %s658_s20  ;;  %s845_s20 = smov %s733_s27 }
 0x1f6   : > { %s846_s21 = smov %s722_s24  ;;  %17 = sbr.rel (!%p15_p3) target bundleno = 3 (0x3), region = 75 }
 0x1fd   :  { %443 = vsyncpa [#allocation3], 1 }
 0x1fe   :  { %445 = vsyncpa [#allocation3 + $0x1], 1 }

</bundles_post_ra>
